<compile_context>
chip_gen: v6e
topology: v6e:2x2x1
jax: 0.10.0
libtpu: 0.0.40
codegen_flags: <defaults>
</compile_context>

<pallas_src>
import jax
import jax.numpy as jnp
from jax.experimental import pallas as pl
from jax.experimental.pallas import tpu as pltpu


def _round_up(x, m):
    return ((x + m - 1) // m) * m


def _mlp_kernel(x_ref, w1_ref, b1_ref, w2_ref, b2_ref, w3_ref, b3_ref, o_ref):
    # x / weights are bf16; every dot accumulates in f32 on the MXU.
    x = x_ref[...]

    # fc1 + ReLU (bias add + max are VPU filler under the MXU slot)
    h1 = jnp.dot(x, w1_ref[...], preferred_element_type=jnp.float32) + b1_ref[...]
    h1 = jnp.maximum(h1, 0.0).astype(jnp.bfloat16)

    # fc2 + ReLU
    h2 = jnp.dot(h1, w2_ref[...], preferred_element_type=jnp.float32) + b2_ref[...]
    h2 = jnp.maximum(h2, 0.0).astype(jnp.bfloat16)

    # fc3 (class dim padded to 128; pad columns carry -1e30 bias)
    z = jnp.dot(h2, w3_ref[...], preferred_element_type=jnp.float32) + b3_ref[...]

    # log_softmax along the class dim; pad columns contribute exp(-huge) == 0.
    m = jnp.max(z, axis=-1, keepdims=True)
    s = z - m
    lse = jnp.log(jnp.sum(jnp.exp(s), axis=-1, keepdims=True))
    o_ref[...] = (s - lse).astype(o_ref.dtype)


def fc_network_forward(image, params):
    """image: (B, 1, 28, 28) float32 (NCHW). Returns (B, 10) log-probabilities."""
    w1, b1, w2, b2, w3, b3 = params
    B = image.shape[0]
    x = image.reshape(B, -1).astype(jnp.float32)  # (B, 784), same as torch .view
    in_dim, h1_dim = w1.shape
    _, h2_dim = w2.shape
    _, out_dim = w3.shape
    n_pad = 128  # lane-dense class dim

    # ---- batch tiling: TB multiple of 8 (f32/bf16 sublane), <= 256 ----
    TB = 256 if B >= 256 else _round_up(B, 8)
    B_pad = _round_up(B, TB)
    if B_pad != B:
        x = jnp.pad(x, ((0, B_pad - B), (0, 0)))

    # ---- one-time host-side casts / padding ----
    x_bf = x.astype(jnp.bfloat16)
    w1_bf = w1.astype(jnp.bfloat16)
    w2_bf = w2.astype(jnp.bfloat16)
    w3_p = jnp.pad(w3, ((0, 0), (0, n_pad - out_dim))).astype(jnp.bfloat16)
    # Pad bias with a huge negative so padded logits vanish under softmax.
    b3_p = jnp.pad(b3.astype(jnp.float32), ((0, 0), (0, n_pad - out_dim)),
                   constant_values=-1e30)
    b1_f = b1.astype(jnp.float32)
    b2_f = b2.astype(jnp.float32)

    grid = (B_pad // TB,)

    def tiled(shape):          # x / out: indexed along the batch grid axis
        return pl.BlockSpec(shape, lambda i: (0,) * (len(shape) - 2) + (i, 0))

    def resident(shape):       # weights / biases: constant block -> stay in VMEM
        return pl.BlockSpec(shape, lambda i: tuple(0 for _ in shape))

    out = pl.pallas_call(
        _mlp_kernel,
        out_shape=jax.ShapeDtypeStruct((B_pad, n_pad), jnp.float32),
        grid_spec=pltpu.PrefetchScalarGridSpec(
            num_scalar_prefetch=0,
            grid=grid,
            in_specs=[
                tiled((TB, in_dim)),
                resident((in_dim, h1_dim)),
                resident((1, h1_dim)),
                resident((h1_dim, h2_dim)),
                resident((1, h2_dim)),
                resident((h2_dim, n_pad)),
                resident((1, n_pad)),
            ],
            out_specs=tiled((TB, n_pad)),
        ),
        compiler_params=pltpu.CompilerParams(
            dimension_semantics=("parallel",),
            vmem_limit_bytes=16 << 20,
        ),
    )(x_bf, w1_bf, b1_f, w2_bf, b2_f, w3_p, b3_p)

    return out[:B, :out_dim]


def init_params(key):
    """Deterministic init mimicking nn.Linear default (uniform +/- 1/sqrt(fan_in)).
    Weights stored transposed as (in_features, out_features)."""
    dims = [(28 * 28, 512), (512, 128), (128, 10)]
    params = []
    keys = jax.random.split(key, 2 * len(dims))
    for i, (fan_in, fan_out) in enumerate(dims):
        bound = 1.0 / jnp.sqrt(fan_in)
        w = jax.random.uniform(keys[2 * i], (fan_in, fan_out), jnp.float32,
                               minval=-bound, maxval=bound)
        b = jax.random.uniform(keys[2 * i + 1], (1, fan_out), jnp.float32,
                               minval=-bound, maxval=bound)
        params += [w, b]
    return tuple(params)


def _reference_forward_bf16(image, params):
    """Pure-JAX reference with the same bf16-matmul / f32-accumulate numerics."""
    w1, b1, w2, b2, w3, b3 = params
    x = image.reshape(image.shape[0], -1).astype(jnp.bfloat16)
    h1 = jnp.dot(x, w1.astype(jnp.bfloat16), preferred_element_type=jnp.float32) + b1
    h1 = jax.nn.relu(h1).astype(jnp.bfloat16)
    h2 = jnp.dot(h1, w2.astype(jnp.bfloat16), preferred_element_type=jnp.float32) + b2
    h2 = jax.nn.relu(h2).astype(jnp.bfloat16)
    z = jnp.dot(h2, w3.astype(jnp.bfloat16), preferred_element_type=jnp.float32) + b3
    return jax.nn.log_softmax(z, axis=1)


def _reference_forward_f32(image, params):
    w1, b1, w2, b2, w3, b3 = params
    x = image.reshape(image.shape[0], -1)
    h1 = jax.nn.relu(x @ w1 + b1)
    h2 = jax.nn.relu(h1 @ w2 + b2)
    return jax.nn.log_softmax(h2 @ w3 + b3, axis=1)


if __name__ == "__main__":
    key = jax.random.PRNGKey(0)
    pkey, xkey = jax.random.split(key)
    params = init_params(pkey)

    # Small MNIST-like batch: (B=2, C=1, H=28, W=28), NCHW like PyTorch.
    image = jax.random.normal(xkey, (2, 1, 28, 28), dtype=jnp.float32)

    out = fc_network_forward(image, params)
    out = jax.block_until_ready(out)
    assert out.shape == (2, 10)
    assert bool(jnp.all(jnp.isfinite(out)))

    # Exact-numerics check vs a bf16/f32-accumulate pure-JAX reference.
    ref_bf16 = _reference_forward_bf16(image, params)
    assert jnp.allclose(out, ref_bf16, atol=2e-3, rtol=2e-3), \
        "mismatch vs bf16 pure-JAX reference"

    # Semantic sanity check vs the full-f32 reference (bf16 rounding tolerance).
    ref_f32 = _reference_forward_f32(image, params)
    assert jnp.allclose(out, ref_f32, atol=5e-2, rtol=5e-2), \
        "mismatch vs f32 pure-JAX reference"

    print("KERNEL_OK")
</pallas_src>

<mosaic_0001>
module attributes {stable_mosaic.version = 11 : i64} {
  func.func @_mlp_kernel(%arg0: i32, %arg1: memref<8x784xbf16, #tpu.memory_space<vmem>>, %arg2: memref<784x512xbf16, #tpu.memory_space<vmem>>, %arg3: memref<1x512xf32, #tpu.memory_space<vmem>>, %arg4: memref<512x128xbf16, #tpu.memory_space<vmem>>, %arg5: memref<1x128xf32, #tpu.memory_space<vmem>>, %arg6: memref<128x128xbf16, #tpu.memory_space<vmem>>, %arg7: memref<1x128xf32, #tpu.memory_space<vmem>>, %arg8: memref<8x128xf32, #tpu.memory_space<vmem>>) attributes {dimension_semantics = [#tpu.dimension_semantics<parallel>], iteration_bounds = array<i64: 1>, scalar_prefetch = 0 : i64, scratch_operands = 0 : i64, tpu.core_type = #tpu.core_type<tc>, window_params = [{transform_indices = @transform_0, window_bounds = array<i64: 8, 784>}, {pipeline_mode = #tpu.pipeline_mode<synchronous>, transform_indices = @transform_1, window_bounds = array<i64: 784, 512>}, {pipeline_mode = #tpu.pipeline_mode<synchronous>, transform_indices = @transform_2, window_bounds = array<i64: 1, 512>}, {pipeline_mode = #tpu.pipeline_mode<synchronous>, transform_indices = @transform_3, window_bounds = array<i64: 512, 128>}, {pipeline_mode = #tpu.pipeline_mode<synchronous>, transform_indices = @transform_4, window_bounds = array<i64: 1, 128>}, {pipeline_mode = #tpu.pipeline_mode<synchronous>, transform_indices = @transform_5, window_bounds = array<i64: 128, 128>}, {pipeline_mode = #tpu.pipeline_mode<synchronous>, transform_indices = @transform_6, window_bounds = array<i64: 1, 128>}, {transform_indices = @transform_7, window_bounds = array<i64: 8, 128>}]} {
    %c0 = arith.constant 0 : index
    %c0_0 = arith.constant 0 : index
    %0 = vector.load %arg1[%c0, %c0_0] : memref<8x784xbf16, #tpu.memory_space<vmem>>, vector<8x784xbf16>
    %c0_1 = arith.constant 0 : index
    %c0_2 = arith.constant 0 : index
    %1 = vector.load %arg2[%c0_1, %c0_2] : memref<784x512xbf16, #tpu.memory_space<vmem>>, vector<784x512xbf16>
    %cst = arith.constant dense<0.000000e+00> : vector<8x512xf32>
    %2 = tpu.matmul %0, %1, %cst {dimension_numbers = #tpu.dot_dimension_numbers<[1], [0], [0], [1], [0, 0, 1, 1], [], []>} : vector<8x784xbf16>, vector<784x512xbf16>, vector<8x512xf32> -> vector<8x512xf32>
    %c0_3 = arith.constant 0 : index
    %c0_4 = arith.constant 0 : index
    %3 = vector.load %arg3[%c0_3, %c0_4] : memref<1x512xf32, #tpu.memory_space<vmem>>, vector<1x512xf32>
    %4 = vector.broadcast %3 : vector<1x512xf32> to vector<8x512xf32>
    %5 = arith.addf %2, %4 : vector<8x512xf32>
    %cst_5 = arith.constant 0.000000e+00 : f32
    %6 = vector.broadcast %cst_5 : f32 to vector<8x512xf32>
    %7 = arith.maximumf %5, %6 : vector<8x512xf32>
    %8 = arith.truncf %7 : vector<8x512xf32> to vector<8x512xbf16>
    %c0_6 = arith.constant 0 : index
    %c0_7 = arith.constant 0 : index
    %9 = vector.load %arg4[%c0_6, %c0_7] : memref<512x128xbf16, #tpu.memory_space<vmem>>, vector<512x128xbf16>
    %cst_8 = arith.constant dense<0.000000e+00> : vector<8x128xf32>
    %10 = tpu.matmul %8, %9, %cst_8 {dimension_numbers = #tpu.dot_dimension_numbers<[1], [0], [0], [1], [0, 0, 1, 1], [], []>} : vector<8x512xbf16>, vector<512x128xbf16>, vector<8x128xf32> -> vector<8x128xf32>
    %c0_9 = arith.constant 0 : index
    %c0_10 = arith.constant 0 : index
    %11 = vector.load %arg5[%c0_9, %c0_10] : memref<1x128xf32, #tpu.memory_space<vmem>>, vector<1x128xf32>
    %12 = vector.broadcast %11 : vector<1x128xf32> to vector<8x128xf32>
    %13 = arith.addf %10, %12 : vector<8x128xf32>
    %cst_11 = arith.constant 0.000000e+00 : f32
    %14 = vector.broadcast %cst_11 : f32 to vector<8x128xf32>
    %15 = arith.maximumf %13, %14 : vector<8x128xf32>
    %16 = arith.truncf %15 : vector<8x128xf32> to vector<8x128xbf16>
    %c0_12 = arith.constant 0 : index
    %c0_13 = arith.constant 0 : index
    %17 = vector.load %arg6[%c0_12, %c0_13] : memref<128x128xbf16, #tpu.memory_space<vmem>>, vector<128x128xbf16>
    %cst_14 = arith.constant dense<0.000000e+00> : vector<8x128xf32>
    %18 = tpu.matmul %16, %17, %cst_14 {dimension_numbers = #tpu.dot_dimension_numbers<[1], [0], [0], [1], [0, 0, 1, 1], [], []>} : vector<8x128xbf16>, vector<128x128xbf16>, vector<8x128xf32> -> vector<8x128xf32>
    %c0_15 = arith.constant 0 : index
    %c0_16 = arith.constant 0 : index
    %19 = vector.load %arg7[%c0_15, %c0_16] : memref<1x128xf32, #tpu.memory_space<vmem>>, vector<1x128xf32>
    %20 = vector.broadcast %19 : vector<1x128xf32> to vector<8x128xf32>
    %21 = arith.addf %18, %20 : vector<8x128xf32>
    %cst_17 = arith.constant dense<0xFF800000> : vector<8xf32>
    %22 = vector.multi_reduction <maximumf>, %21, %cst_17 [1] : vector<8x128xf32> to vector<8xf32>
    %23 = vector.shape_cast %22 : vector<8xf32> to vector<8x1xf32>
    %24 = vector.broadcast %23 : vector<8x1xf32> to vector<8x128xf32>
    %25 = arith.subf %21, %24 : vector<8x128xf32>
    %26 = math.exp %25 : vector<8x128xf32>
    %cst_18 = arith.constant dense<0.000000e+00> : vector<8xf32>
    %27 = vector.multi_reduction <add>, %26, %cst_18 [1] : vector<8x128xf32> to vector<8xf32>
    %28 = vector.shape_cast %27 : vector<8xf32> to vector<8x1xf32>
    %29 = math.log %28 : vector<8x1xf32>
    %30 = vector.broadcast %29 : vector<8x1xf32> to vector<8x128xf32>
    %31 = arith.subf %25, %30 : vector<8x128xf32>
    %c0_19 = arith.constant 0 : index
    %c0_20 = arith.constant 0 : index
    %32 = vector.load %arg8[%c0_19, %c0_20] : memref<8x128xf32, #tpu.memory_space<vmem>>, vector<8x128xf32>
    tpu.vector_store %arg8[%c0_19, %c0_20], %31 {strides = array<i32>} : memref<8x128xf32, #tpu.memory_space<vmem>>, vector<8x128xf32>,
    return
  }
  func.func @transform_0(%arg0: i32) -> (i32, i32) {
    %c0_i32 = arith.constant 0 : i32
    %c0_i32_0 = arith.constant 0 : i32
    return %arg0, %c0_i32 : i32, i32
  }
  func.func @transform_1(%arg0: i32) -> (i32, i32) {
    %c0_i32 = arith.constant 0 : i32
    %c0_i32_0 = arith.constant 0 : i32
    %c0_i32_1 = arith.constant 0 : i32
    return %c0_i32, %c0_i32_0 : i32, i32
  }
  func.func @transform_2(%arg0: i32) -> (i32, i32) {
    %c0_i32 = arith.constant 0 : i32
    %c0_i32_0 = arith.constant 0 : i32
    %c0_i32_1 = arith.constant 0 : i32
    return %c0_i32, %c0_i32_0 : i32, i32
  }
  func.func @transform_3(%arg0: i32) -> (i32, i32) {
    %c0_i32 = arith.constant 0 : i32
    %c0_i32_0 = arith.constant 0 : i32
    %c0_i32_1 = arith.constant 0 : i32
    return %c0_i32, %c0_i32_0 : i32, i32
  }
  func.func @transform_4(%arg0: i32) -> (i32, i32) {
    %c0_i32 = arith.constant 0 : i32
    %c0_i32_0 = arith.constant 0 : i32
    %c0_i32_1 = arith.constant 0 : i32
    return %c0_i32, %c0_i32_0 : i32, i32
  }
  func.func @transform_5(%arg0: i32) -> (i32, i32) {
    %c0_i32 = arith.constant 0 : i32
    %c0_i32_0 = arith.constant 0 : i32
    %c0_i32_1 = arith.constant 0 : i32
    return %c0_i32, %c0_i32_0 : i32, i32
  }
  func.func @transform_6(%arg0: i32) -> (i32, i32) {
    %c0_i32 = arith.constant 0 : i32
    %c0_i32_0 = arith.constant 0 : i32
    %c0_i32_1 = arith.constant 0 : i32
    return %c0_i32, %c0_i32_0 : i32, i32
  }
  func.func @transform_7(%arg0: i32) -> (i32, i32) {
    %c0_i32 = arith.constant 0 : i32
    %c0_i32_0 = arith.constant 0 : i32
    return %arg0, %c0_i32 : i32, i32
  }
}

</mosaic_0001>

<bundles_post_ra>
// kernel: tpu_custom_call.1
= control target key start
LH: loop header
LB: loop body
LE: loop exit
PB: predicated region body
PF: predicated region fallthrough
CT: control target
= control target key end

     0   :  { %12 = vsyncpa [#allocation3], 0  ;;  %s3069_s0 = inlined_call_operand.hbm [shape: bf16[8,784], index: 0, kind: input, shape index: {}]   ;;  %s3070_s1 = inlined_call_operand.hbm [shape: bf16[784,512], index: 1, kind: input, shape index: {}]   ;;  %s3071_s2 = inlined_call_operand.hbm [shape: f32[1,512], index: 2, kind: input, shape index: {}]   ;;  %s3072_s3 = inlined_call_operand.hbm [shape: bf16[512,128], index: 3, kind: input, shape index: {}]   ;;  %s3073_s4 = inlined_call_operand.vmem [shape: f32[1,128], index: 4, kind: input, shape index: {}]   ;;  %s3074_s5 = inlined_call_operand.hbm [shape: bf16[128,128], index: 5, kind: input, shape index: {}]   ;;  %s3075_s6 = inlined_call_operand.vmem [shape: f32[1,128], index: 6, kind: input, shape index: {}]   ;;  %s3076_s7 = inlined_call_operand.hbm [shape: f32[8,128], index: 7, kind: output, shape index: {}]  }
   0x1   :  { %13 = vsyncpa [#allocation6], 0 }
   0x2   :  { %14 = vsyncpa [#allocation9], 0 }
   0x3   :  { %15 = vsyncpa [#allocation4], 0  ;;  %s2948_s24 = smov [#allocation5]  }
   0x4   :  { %s31_s25 = sshll.u32 %s2948_s24, 4  ;;  %s32_s25 = int_to_ptr.vmem [resolvable:$true] %s31_s25 }
   0x5   :  { %s2828_s26 = scalar_lea.vmem %s32_s25, 25088  ;;  %p2833_p1 = scmp.lt.s32.totalorder %s32_s25, %s32_s25 }
   0x6   :  { %p2829_p0 = scmp.ne.s32.totalorder %s32_s25, %s2828_s26  ;;  %p2834_p2 = scmp.lt.s32.totalorder %s2828_s26, %s2828_s26 }
   0x8   :  { %p2835_p3 = por %p2834_p2, %p2833_p1 }
   0xa   :  { %p2836_p4 = pnand %p2835_p3, %p2829_p0 }
   0xc   :  { %2839 = shalt.err (!%p2836_p4)
}
   0xd   :  { %s2949_s27 = smov 256   ;;  %s2950_s28 = smov 16  }
   0xe   :  { %37 = dma.hbm_to_vmem [thread:$0]  %s3070_s1, 25088, %s32_s25, [#allocation6], %s2949_s27, %s2949_s27, %s2950_s28  }
   0xf   :  { %s2951_s8 = smov [#allocation8]  }
  0x10   :  { %s53_s9 = sshll.u32 %s2951_s8, 4  ;;  %s54_s9 = int_to_ptr.vmem [resolvable:$true] %s53_s9 }
  0x11   :  { %s2848_s10 = scalar_lea.vmem %s54_s9, 4096  ;;  %p2853_p6 = scmp.lt.s32.totalorder %s54_s9, %s54_s9 }
  0x12   :  { %p2849_p5 = scmp.ne.s32.totalorder %s54_s9, %s2848_s10  ;;  %p2854_p7 = scmp.lt.s32.totalorder %s2848_s10, %s2848_s10 }
  0x14   :  { %p2855_p8 = por %p2854_p7, %p2853_p6 }
  0x16   :  { %p2856_p9 = pnand %p2855_p8, %p2849_p5 }
  0x18   :  { %2859 = shalt.err (!%p2856_p9)
}
  0x19   :  { %s2952_s11 = smov 64   ;;  %s2953_s12 = smov 4  }
  0x1a   :  { %59 = dma.hbm_to_vmem [thread:$0]  %s3072_s3, 4096, %s54_s9, [#allocation9], %s2952_s11, %s2952_s11, %s2953_s12  }
  0x1b   :  { %s2954_s1 = smov [#allocation2]   ;;  %s2955_s16 = smov [#allocation7]  }
  0x1c   :  { %s22_s15 = sshll.u32 %s2954_s1, 4  ;;  %s44_s17 = sshll.u32 %s2955_s16, 4  ;;  %s23_s15 = int_to_ptr.vmem [resolvable:$true] %s22_s15  ;;  %s45_s17 = int_to_ptr.vmem [resolvable:$true] %s44_s17 }
  0x1d   :  { %s2868_s18 = scalar_lea.vmem %s23_s15, 448  ;;  %p2873_p11 = scmp.lt.s32.totalorder %s23_s15, %s23_s15 }
  0x1e   :  { %p2869_p10 = scmp.ne.s32.totalorder %s23_s15, %s2868_s18  ;;  %p2874_p12 = scmp.lt.s32.totalorder %s2868_s18, %s2868_s18 }
  0x20   :  { %p2875_p13 = por %p2874_p12, %p2873_p11 }
  0x22   :  { %p2876_p0 = pnand %p2875_p13, %p2869_p10 }
  0x24   :  { %2879 = shalt.err (!%p2876_p0)
}
  0x25   :  { %25 = dma.hbm_to_vmem [thread:$0]  %s3069_s0, 448, %s23_s15, [#allocation3]  }
  0x26   :  { %s2888_s21 = scalar_lea.vmem %s45_s17, 64  ;;  %p2893_p2 = scmp.lt.s32.totalorder %s45_s17, %s45_s17 }
  0x27   :  { %p2889_p1 = scmp.ne.s32.totalorder %s45_s17, %s2888_s21  ;;  %p2894_p3 = scmp.lt.s32.totalorder %s2888_s21, %s2888_s21 }
  0x29   :  { %p2895_p4 = por %p2894_p3, %p2893_p2 }
  0x2b   :  { %p2896_p5 = pnand %p2895_p4, %p2889_p1 }
  0x2d   :  { %2899 = shalt.err (!%p2896_p5)
}
  0x2e   :  { %47 = dma.hbm_to_vmem [thread:$0]  %s3071_s2, 64, %s45_s17, [#allocation6]  }
  0x2f   :  { %s2956_s23 = smov [#allocation10]  }
  0x30   :  { %s67_s24 = sshll.u32 %s2956_s23, 4  ;;  %s68_s24 = int_to_ptr.vmem [resolvable:$true] %s67_s24 }
  0x31   :  { %s2908_s25 = scalar_lea.vmem %s68_s24, 1024  ;;  %p2913_p7 = scmp.lt.s32.totalorder %s68_s24, %s68_s24 }
  0x32   :  { %p2909_p6 = scmp.ne.s32.totalorder %s68_s24, %s2908_s25  ;;  %p2914_p8 = scmp.lt.s32.totalorder %s2908_s25, %s2908_s25 }
  0x34   :  { %p2915_p9 = por %p2914_p8, %p2913_p7 }
  0x36   :  { %p2916_p10 = pnand %p2915_p9, %p2909_p6 }
  0x38   :  { %2919 = shalt.err (!%p2916_p10)
}
  0x39   :  { %73 = dma.hbm_to_vmem [thread:$0]  %s3074_s5, 1024, %s68_s24, [#allocation9], %s2952_s11, %s2952_s11, %s2953_s12  }
  0x3a   :  { %2940 = dma.done.wait [#allocation3], 448  }
  0x3b   :  { %2941 = vsyncadd [#allocation3], 4294966848 }
  0x3c   :  { %2942 = dma.done.wait [#allocation6], 25152  }
  0x3d   :  { %2943 = vsyncadd [#allocation6], 4294942144 }
  0x3e   :  { %2944 = dma.done.wait [#allocation9], 5120  }
  0x3f   :  { %2945 = vsyncadd [#allocation9], 4294962176  ;;  %v2475_v0 = vld [vmem:[#allocation5 + $0xe4] ss:$16 sps:$4 sm:$0xff]   ;;  %v2479_v2 = vld [vmem:[#allocation5 + $0xe0] ss:$16 sps:$4 sm:$0xff]  }
  0x40   :  { %v2477_v1 = vld [vmem:[#allocation5 + $0x2e4] ss:$16 sps:$4 sm:$0xff]   ;;  %1322 = vmatprep.subr.bf16.mxu0 %v2475_v0  ;;  %v2480_v3 = vld [vmem:[#allocation5 + $0x2e0] ss:$16 sps:$4 sm:$0xff]   ;;  %vm1318_vm0 = vcmask 130048   ;;  %vm2959_vm1 = vmmov 0  }
  0x41   :  { %1363 = vmatprep.subr.bf16.mxu1 %v2477_v1  ;;  %v2481_v4 = vld [vmem:[#allocation5 + $0xc4] ss:$16 sps:$4 sm:$0xff]   ;;  %1323 = vmatpush1.bf16.msra.mxu0 %v2479_v2  ;;  %v2485_v6 = vld [vmem:[#allocation5 + $0xc0] ss:$16 sps:$4 sm:$0xff]  }
  0x42   :  { %1364 = vmatpush1.bf16.msra.mxu1 %v2480_v3  ;;  %v2483_v5 = vld [vmem:[#allocation5 + $0x2c4] ss:$16 sps:$4 sm:$0xff]   ;;  %1324 = vmatprep.subr.bf16.mxu0 %v2481_v4  ;;  %v2486_v7 = vld [vmem:[#allocation5 + $0x2c0] ss:$16 sps:$4 sm:$0xff]  }
  0x43   :  { %1365 = vmatprep.subr.bf16.mxu1 %v2483_v5  ;;  %v2487_v8 = vld [vmem:[#allocation5 + $0xa4] ss:$16 sps:$4 sm:$0xff]   ;;  %v2491_v10 = vld [vmem:[#allocation5 + $0xa0] ss:$16 sps:$4 sm:$0xff]  }
  0x44   :  { %v2489_v9 = vld [vmem:[#allocation5 + $0x2a4] ss:$16 sps:$4 sm:$0xff]   ;;  %v2492_v11 = vld [vmem:[#allocation5 + $0x2a0] ss:$16 sps:$4 sm:$0xff]  }
  0x45   :  { %1325 = vmatpush1.bf16.msra.mxu0 %v2485_v6  ;;  %v2493_v12 = vld [vmem:[#allocation5 + $0x84] ss:$16 sps:$4 sm:$0xff]   ;;  %v2497_v14 = vld [vmem:[#allocation5 + $0x80] ss:$16 sps:$4 sm:$0xff]  }
  0x46   :  { %1366 = vmatpush1.bf16.msra.mxu1 %v2486_v7  ;;  %1326 = vmatprep.subr.bf16.mxu0 %v2487_v8  ;;  %v2495_v13 = vld [vmem:[#allocation5 + $0x284] ss:$16 sps:$4 sm:$0xff]   ;;  %v2498_v15 = vld [vmem:[#allocation5 + $0x280] ss:$16 sps:$4 sm:$0xff]  }
  0x47   :  { %1367 = vmatprep.subr.bf16.mxu1 %v2489_v9  ;;  %v2499_v16 = vld [vmem:[#allocation5 + $0x64] ss:$16 sps:$4 sm:$0xff]   ;;  %v2503_v18 = vld [vmem:[#allocation5 + $0x60] ss:$16 sps:$4 sm:$0xff]  }
  0x48   :  { %v2501_v17 = vld [vmem:[#allocation5 + $0x264] ss:$16 sps:$4 sm:$0xff]   ;;  %v2504_v19 = vld [vmem:[#allocation5 + $0x260] ss:$16 sps:$4 sm:$0xff]  }
  0x49   :  { %1327 = vmatpush1.bf16.msra.mxu0 %v2491_v10  ;;  %v2505_v20 = vld [vmem:[#allocation5 + $0x44] ss:$16 sps:$4 sm:$0xff]   ;;  %v2509_v22 = vld [vmem:[#allocation5 + $0x40] ss:$16 sps:$4 sm:$0xff]  }
  0x4a   :  { %1368 = vmatpush1.bf16.msra.mxu1 %v2492_v11  ;;  %1328 = vmatprep.subr.bf16.mxu0 %v2493_v12  ;;  %v2507_v21 = vld [vmem:[#allocation5 + $0x244] ss:$16 sps:$4 sm:$0xff]   ;;  %v2510_v23 = vld [vmem:[#allocation5 + $0x240] ss:$16 sps:$4 sm:$0xff]   ;;  %v2586_v11 = vld [vmem:[#allocation5 + $0xec] ss:$16 sps:$4 sm:$0xff]  }
  0x4b   :  { %1369 = vmatprep.subr.bf16.mxu1 %v2495_v13  ;;  %v2511_v24 = vld [vmem:[#allocation5 + $0x24] ss:$16 sps:$4 sm:$0xff]   ;;  %v2515_v26 = vld [vmem:[#allocation5 + $0x20] ss:$16 sps:$4 sm:$0xff]   ;;  %v2957_v13 = vmov 0  }
  0x4c   :  { %v2513_v25 = vld [vmem:[#allocation5 + $0x224] ss:$16 sps:$4 sm:$0xff]   ;;  %v2516_v27 = vld [vmem:[#allocation5 + $0x220] ss:$16 sps:$4 sm:$0xff]  }
  0x4d   :  { %1329 = vmatpush1.bf16.msra.mxu0 %v2497_v14  ;;  %v2517_v28 = vld [vmem:[#allocation5 + $0x4] ss:$16 sps:$4 sm:$0xff]   ;;  %v2521_v30 = vld [vmem:[#allocation5] ss:$16 sps:$4 sm:$0xff]  }
  0x4e   :  { %1370 = vmatpush1.bf16.msra.mxu1 %v2498_v15  ;;  %1330 = vmatprep.subr.bf16.mxu0 %v2499_v16  ;;  %v2519_v29 = vld [vmem:[#allocation5 + $0x204] ss:$16 sps:$4 sm:$0xff]   ;;  %v2522_v31 = vld [vmem:[#allocation5 + $0x200] ss:$16 sps:$4 sm:$0xff]   ;;  %v2584_v15 = vld [vmem:[#allocation5 + $0xe8] ss:$16 sps:$4 sm:$0xff]  }
  0x4f   :  { %1371 = vmatprep.subr.bf16.mxu1 %v2501_v17  ;;  %v2523_v32 = vld [vmem:[#allocation5 + $0x1e4] ss:$16 sps:$4 sm:$0xff]   ;;  %v2527_v34 = vld [vmem:[#allocation5 + $0x1e0] ss:$16 sps:$4 sm:$0xff]   ;;  %v3035_v17 = vld [vmem:[#allocation2 + $0x18] ss:$0 sps:$4 sm:$0xff]  }
  0x50   :  { %v2525_v33 = vld [vmem:[#allocation5 + $0x3e4] ss:$16 sps:$4 sm:$0xff]   ;;  %v2528_v35 = vld [vmem:[#allocation5 + $0x3e0] ss:$16 sps:$4 sm:$0xff]  }
  0x51   :  { %1331 = vmatpush1.bf16.msra.mxu0 %v2503_v18  ;;  %v2529_v36 = vld [vmem:[#allocation5 + $0x1c4] ss:$16 sps:$4 sm:$0xff]   ;;  %v2533_v38 = vld [vmem:[#allocation5 + $0x1c0] ss:$16 sps:$4 sm:$0xff]   ;;  %v2593_v18 = vld [vmem:[#allocation5 + $0xcc] ss:$16 sps:$4 sm:$0xff]  }
  0x52   :  { %1372 = vmatpush1.bf16.msra.mxu1 %v2504_v19  ;;  %1332 = vmatprep.subr.bf16.mxu0 %v2505_v20  ;;  %v2531_v37 = vld [vmem:[#allocation5 + $0x3c4] ss:$16 sps:$4 sm:$0xff]   ;;  %v2534_v39 = vld [vmem:[#allocation5 + $0x3c0] ss:$16 sps:$4 sm:$0xff]   ;;  %v2591_v20 = vld [vmem:[#allocation5 + $0xc8] ss:$16 sps:$4 sm:$0xff]  }
  0x53   :  { %1373 = vmatprep.subr.bf16.mxu1 %v2507_v21  ;;  %v2535_v40 = vld [vmem:[#allocation5 + $0x1a4] ss:$16 sps:$4 sm:$0xff]   ;;  %v2539_v42 = vld [vmem:[#allocation5 + $0x1a0] ss:$16 sps:$4 sm:$0xff]  }
  0x54   :  { %v2537_v41 = vld [vmem:[#allocation5 + $0x3a4] ss:$16 sps:$4 sm:$0xff]   ;;  %v2540_v43 = vld [vmem:[#allocation5 + $0x3a0] ss:$16 sps:$4 sm:$0xff]  }
  0x55   :  { %1333 = vmatpush1.bf16.msra.mxu0 %v2509_v22  ;;  %v2541_v44 = vld [vmem:[#allocation5 + $0x184] ss:$16 sps:$4 sm:$0xff]   ;;  %v93_v48 = vld [vmem:[#allocation2 + $0x8] sm:$0xff] }
  0x56   :  { %1374 = vmatpush1.bf16.msra.mxu1 %v2510_v23  ;;  %1334 = vmatprep.subr.bf16.mxu0 %v2511_v24  ;;  %v2543_v45 = vld [vmem:[#allocation5 + $0x384] ss:$16 sps:$4 sm:$0xff]   ;;  %v2545_v49 = vld [vmem:[#allocation5 + $0x180] ss:$16 sps:$4 sm:$0xff]   ;;  %v3024_v51 = vcombine.high %v93_v48, %v93_v48  ;;  %v3030_v7 = vcombine.low %v93_v48, %v93_v48  ;;  %v2599_v22 = vld [vmem:[#allocation5 + $0xac] ss:$16 sps:$4 sm:$0xff]  }
  0x57   :  { %1375 = vmatprep.subr.bf16.mxu1 %v2513_v25  ;;  %v92_v46 = vld [vmem:[#allocation2] sm:$0xff]  ;;  %v2546_v50 = vld [vmem:[#allocation5 + $0x380] ss:$16 sps:$4 sm:$0xff]   ;;  %v2635_v48 = vld [vmem:[#allocation5 + $0x1ec] ss:$16 sps:$4 sm:$0xff]  }
  0x58   :  { %v3022_v47 = vcombine.high %v92_v46, %v92_v46  ;;  %v2547_v52 = vld [vmem:[#allocation5 + $0x164] ss:$16 sps:$4 sm:$0xff]   ;;  %1395 = vmatprep.mubr.bf16.mxu1 %v3024_v51  ;;  %v2551_v54 = vld [vmem:[#allocation5 + $0x160] ss:$16 sps:$4 sm:$0xff]   ;;  %v3028_v6 = vcombine.low %v92_v46, %v92_v46  ;;  %v2597_v24 = vld [vmem:[#allocation5 + $0xa8] ss:$16 sps:$4 sm:$0xff]  }
  0x59   :  { %1335 = vmatpush1.bf16.msra.mxu0 %v2515_v26  ;;  %v2549_v53 = vld [vmem:[#allocation5 + $0x364] ss:$16 sps:$4 sm:$0xff]   ;;  %v2552_v55 = vld [vmem:[#allocation5 + $0x360] ss:$16 sps:$4 sm:$0xff]   ;;  %v2605_v26 = vld [vmem:[#allocation5 + $0x8c] ss:$16 sps:$4 sm:$0xff]  }
  0x5a   :  { %1376 = vmatpush1.bf16.msra.mxu1 %v2516_v27  ;;  %1336 = vmatprep.subr.bf16.mxu0 %v2517_v28  ;;  %v2553_v56 = vld [vmem:[#allocation5 + $0x144] ss:$16 sps:$4 sm:$0xff]   ;;  %v2557_v58 = vld [vmem:[#allocation5 + $0x140] ss:$16 sps:$4 sm:$0xff]   ;;  %v2603_v28 = vld [vmem:[#allocation5 + $0x88] ss:$16 sps:$4 sm:$0xff]  }
  0x5b   :  { %1377 = vmatprep.subr.bf16.mxu1 %v2519_v29  ;;  %1354 = vmatprep.mubr.bf16.mxu0 %v3022_v47  ;;  %v2555_v57 = vld [vmem:[#allocation5 + $0x344] ss:$16 sps:$4 sm:$0xff]   ;;  %v2558_v59 = vld [vmem:[#allocation5 + $0x340] ss:$16 sps:$4 sm:$0xff]   ;;  %v2627_v46 = vld [vmem:[#allocation5 + $0x8] ss:$16 sps:$4 sm:$0xff]  }
  0x5c   :  { %v2559_v60 = vld [vmem:[#allocation5 + $0x124] ss:$16 sps:$4 sm:$0xff]   ;;  %v2563_v62 = vld [vmem:[#allocation5 + $0x120] ss:$16 sps:$4 sm:$0xff]  }
  0x5d   :  { %1337 = vmatpush1.bf16.msra.mxu0 %v2521_v30  ;;  %v2561_v61 = vld [vmem:[#allocation5 + $0x324] ss:$16 sps:$4 sm:$0xff]   ;;  %v2564_v63 = vld [vmem:[#allocation5 + $0x320] ss:$16 sps:$4 sm:$0xff]   ;;  %v2611_v30 = vld [vmem:[#allocation5 + $0x6c] ss:$16 sps:$4 sm:$0xff]  }
  0x5e   :  { %1378 = vmatpush1.bf16.msra.mxu1 %v2522_v31  ;;  %1338 = vmatprep.subr.bf16.mxu0 %v2523_v32  ;;  %v2565_v0 = vld [vmem:[#allocation5 + $0x104] ss:$16 sps:$4 sm:$0xff]   ;;  %v2569_v2 = vld [vmem:[#allocation5 + $0x100] ss:$16 sps:$4 sm:$0xff]  }
  0x5f   :  { %1379 = vmatprep.subr.bf16.mxu1 %v2525_v33  ;;  %v2567_v1 = vld [vmem:[#allocation5 + $0x304] ss:$16 sps:$4 sm:$0xff]   ;;  %v2570_v3 = vld [vmem:[#allocation5 + $0x300] ss:$16 sps:$4 sm:$0xff]  }
  0x60   :  { %v2577_v4 = vld [vmem:[#allocation5 + $0x4e4] ss:$16 sps:$4 sm:$0xff]   ;;  %v2575_v8 = vld [vmem:[#allocation5 + $0x4e0] ss:$16 sps:$4 sm:$0xff]  }
  0x61   :  { %1339 = vmatpush2.bf16.msra.mxu0 %v2527_v34  ;;  %v2580_v5 = vld [vmem:[#allocation5 + $0x604] ss:$16 sps:$4 sm:$0xff]   ;;  %v2578_v9 = vld [vmem:[#allocation5 + $0x600] ss:$16 sps:$4 sm:$0xff]   ;;  %v2609_v34 = vld [vmem:[#allocation5 + $0x68] ss:$16 sps:$4 sm:$0xff]  }
  0x62   :  { %1380 = vmatpush2.bf16.msra.mxu1 %v2528_v35  ;;  %1340 = vmatprep.subr.bf16.mxu0 %v2529_v36  ;;  %v2583_v10 = vld [vmem:[#allocation5 + $0x4c4] ss:$16 sps:$4 sm:$0xff]   ;;  %v2581_v12 = vld [vmem:[#allocation5 + $0x4c0] ss:$16 sps:$4 sm:$0xff]   ;;  %v2617_v36 = vld [vmem:[#allocation5 + $0x4c] ss:$16 sps:$4 sm:$0xff]  }
  0x63   :  { %1381 = vmatprep.subr.bf16.mxu1 %v2531_v37  ;;  %v2589_v14 = vld [vmem:[#allocation5 + $0x4a4] ss:$16 sps:$4 sm:$0xff]   ;;  %v2587_v16 = vld [vmem:[#allocation5 + $0x4a0] ss:$16 sps:$4 sm:$0xff]  }
  0x64   :  { %v2596_v19 = vld [vmem:[#allocation5 + $0x484] ss:$16 sps:$4 sm:$0xff]   ;;  %v2594_v21 = vld [vmem:[#allocation5 + $0x480] ss:$16 sps:$4 sm:$0xff]  }
  0x65   :  { %1341 = vmatpush2.bf16.msra.mxu0 %v2533_v38  ;;  %v2602_v23 = vld [vmem:[#allocation5 + $0x464] ss:$16 sps:$4 sm:$0xff]   ;;  %v2600_v25 = vld [vmem:[#allocation5 + $0x460] ss:$16 sps:$4 sm:$0xff]   ;;  %v2615_v38 = vld [vmem:[#allocation5 + $0x48] ss:$16 sps:$4 sm:$0xff]  }
  0x66   :  { %1382 = vmatpush2.bf16.msra.mxu1 %v2534_v39  ;;  %1342 = vmatprep.subr.bf16.mxu0 %v2535_v40  ;;  %v2608_v27 = vld [vmem:[#allocation5 + $0x444] ss:$16 sps:$4 sm:$0xff]   ;;  %v2606_v29 = vld [vmem:[#allocation5 + $0x440] ss:$16 sps:$4 sm:$0xff]   ;;  %v2623_v40 = vld [vmem:[#allocation5 + $0x2c] ss:$16 sps:$4 sm:$0xff]  }
  0x67   :  { %1383 = vmatprep.subr.bf16.mxu1 %v2537_v41  ;;  %v2614_v31 = vld [vmem:[#allocation5 + $0x424] ss:$16 sps:$4 sm:$0xff]   ;;  %v2612_v35 = vld [vmem:[#allocation5 + $0x420] ss:$16 sps:$4 sm:$0xff]  }
  0x68   :  { %v3040_v32 = vld [vmem:[#allocation2 + $0x10] sm:$0xff]  ;;  %v2618_v39 = vld [vmem:[#allocation5 + $0x400] ss:$16 sps:$4 sm:$0xff]  }
  0x69   :  { %1343 = vmatpush2.bf16.msra.mxu0 %v2539_v42  ;;  %v3044_v33 = vcombine.high %v3040_v32, %v3040_v32  ;;  %v2620_v37 = vld [vmem:[#allocation5 + $0x404] ss:$16 sps:$4 sm:$0xff]   ;;  %v2621_v42 = vld [vmem:[#allocation5 + $0x28] ss:$16 sps:$4 sm:$0xff]  }
  0x6a   :  { %1384 = vmatpush2.bf16.msra.mxu1 %v2540_v43  ;;  %1344 = vmatprep.subr.bf16.mxu0 %v2541_v44  ;;  %v2626_v41 = vld [vmem:[#allocation5 + $0x5e4] ss:$16 sps:$4 sm:$0xff]   ;;  %v2624_v43 = vld [vmem:[#allocation5 + $0x5e0] ss:$16 sps:$4 sm:$0xff]   ;;  %v2629_v44 = vld [vmem:[#allocation5 + $0xc] ss:$16 sps:$4 sm:$0xff]  }
  0x6b   :  { %1385 = vmatprep.subr.bf16.mxu1 %v2543_v45  ;;  %v2632_v45 = vld [vmem:[#allocation5 + $0x5c4] ss:$16 sps:$4 sm:$0xff]  }
  0x6d   :  { %1345 = vmatpush2.bf16.msra.mxu0 %v2545_v49  ;;  %v2638_v49 = vld [vmem:[#allocation5 + $0x5a4] ss:$16 sps:$4 sm:$0xff]  }
  0x6e   :  { %1386 = vmatpush2.bf16.msra.mxu1 %v2546_v50  ;;  %1346 = vmatprep.subr.bf16.mxu0 %v2547_v52  ;;  %v2633_v50 = vld [vmem:[#allocation5 + $0x1e8] ss:$16 sps:$4 sm:$0xff]   ;;  %v2636_v52 = vld [vmem:[#allocation5 + $0x5a0] ss:$16 sps:$4 sm:$0xff]  }
  0x6f   :  { %1387 = vmatprep.subr.bf16.mxu1 %v2549_v53  ;;  %v2641_v53 = vld [vmem:[#allocation5 + $0x1cc] ss:$16 sps:$4 sm:$0xff]  }
  0x71   :  { %1347 = vmatpush2.bf16.msra.mxu0 %v2551_v54  ;;  %v2644_v54 = vld [vmem:[#allocation5 + $0x584] ss:$16 sps:$4 sm:$0xff]  }
  0x72   :  { %1388 = vmatpush2.bf16.msra.mxu1 %v2552_v55  ;;  %1348 = vmatprep.subr.bf16.mxu0 %v2553_v56  ;;  %v2639_v55 = vld [vmem:[#allocation5 + $0x1c8] ss:$16 sps:$4 sm:$0xff]   ;;  %v2642_v56 = vld [vmem:[#allocation5 + $0x580] ss:$16 sps:$4 sm:$0xff]  }
  0x73   :  { %1389 = vmatprep.subr.bf16.mxu1 %v2555_v57  ;;  %v2647_v57 = vld [vmem:[#allocation5 + $0x1ac] ss:$16 sps:$4 sm:$0xff]  }
  0x75   :  { %1349 = vmatpush2.bf16.msra.mxu0 %v2557_v58  ;;  %v2650_v58 = vld [vmem:[#allocation5 + $0x564] ss:$16 sps:$4 sm:$0xff]  }
  0x76   :  { %1390 = vmatpush2.bf16.msra.mxu1 %v2558_v59  ;;  %1350 = vmatprep.subr.bf16.mxu0 %v2559_v60  ;;  %v2645_v59 = vld [vmem:[#allocation5 + $0x1a8] ss:$16 sps:$4 sm:$0xff]   ;;  %v2648_v60 = vld [vmem:[#allocation5 + $0x560] ss:$16 sps:$4 sm:$0xff]  }
  0x77   :  { %1391 = vmatprep.subr.bf16.mxu1 %v2561_v61  ;;  %v2653_v61 = vld [vmem:[#allocation5 + $0x18c] ss:$16 sps:$4 sm:$0xff]  }
  0x79   :  { %1351 = vmatpush2.bf16.msra.mxu0 %v2563_v62  ;;  %v2656_v62 = vld [vmem:[#allocation5 + $0x544] ss:$16 sps:$4 sm:$0xff]  }
  0x7a   :  { %1392 = vmatpush2.bf16.msra.mxu1 %v2564_v63  ;;  %1352 = vmatprep.subr.bf16.mxu0 %v2565_v0  ;;  %v2651_v63 = vld [vmem:[#allocation5 + $0x188] ss:$16 sps:$4 sm:$0xff]   ;;  %v2654_v0 = vld [vmem:[#allocation5 + $0x540] ss:$16 sps:$4 sm:$0xff]  }
  0x7b   :  { %1393 = vmatprep.subr.bf16.mxu1 %v2567_v1  ;;  %v2659_v1 = vld [vmem:[#allocation5 + $0x16c] ss:$16 sps:$4 sm:$0xff]  }
  0x7d   :  { %1353 = vmatpush2.bf16.msra.mxu0 %v2569_v2  ;;  %v2662_v2 = vld [vmem:[#allocation5 + $0x524] ss:$16 sps:$4 sm:$0xff]  }
  0x7e   :  { %1394 = vmatpush2.bf16.msra.mxu1 %v2570_v3  ;;  %1404 = vmatprep.subr.bf16.mxu0 %v2577_v4  ;;  %v2657_v3 = vld [vmem:[#allocation5 + $0x168] ss:$16 sps:$4 sm:$0xff]   ;;  %v2660_v4 = vld [vmem:[#allocation5 + $0x520] ss:$16 sps:$4 sm:$0xff]  }
  0x7f   :  { %1459 = vmatprep.subr.bf16.mxu1 %v2580_v5  ;;  %v2665_v5 = vld [vmem:[#allocation5 + $0x14c] ss:$16 sps:$4 sm:$0xff]  }
  0x80   :  { %1355 = vmatmul.mubr.bf16.vlgmr.msra.gmra.mxu0 %v3028_v6 }
  0x81   :  { %1396 = vmatmul.mubr.bf16.vlgmr.msra.gmra.mxu1 %v3030_v7  ;;  %1405 = vmatpush1.bf16.msra.mxu0 %v2575_v8  ;;  %v2668_v8 = vld [vmem:[#allocation5 + $0x504] ss:$16 sps:$4 sm:$0xff]  }
  0x82   :  { %1460 = vmatpush1.bf16.msra.mxu1 %v2578_v9  ;;  %1406 = vmatprep.subr.bf16.mxu0 %v2583_v10  ;;  %v2663_v9 = vld [vmem:[#allocation5 + $0x148] ss:$16 sps:$4 sm:$0xff]   ;;  %v2666_v10 = vld [vmem:[#allocation5 + $0x500] ss:$16 sps:$4 sm:$0xff]  }
  0x83   :  { %1477 = vmatprep.mubr.bf16.mxu1 %v2957_v13  ;;  %1486 = vmatprep.subr.bf16.mxu1 %v2586_v11  ;;  %v2673_v11 = vld [vmem:[#allocation5 + $0x12c] ss:$16 sps:$4 sm:$0xff]  }
  0x84   :  { %1436 = vmatprep.mubr.bf16.mxu0 %v3044_v33 }
  0x85   :  { %1407 = vmatpush1.bf16.msra.mxu0 %v2581_v12  ;;  %v2676_v12 = vld [vmem:[#allocation5 + $0x2ec] ss:$16 sps:$4 sm:$0xff]  }
  0x86   :  { %1408 = vmatprep.subr.bf16.mxu0 %v2589_v14  ;;  %v3049_v14 = vcombine.low %v3040_v32, %v3040_v32  ;;  %v2695_v32 = vld [vmem:[#allocation5 + $0x4a8] ss:$16 sps:$4 sm:$0xff]  }
  0x89   :  { %2345 = vmatmul.mubr.msk.bf16.vlgmr.msra.gmra.mxu1 %vm1318_vm0, %v3035_v17  ;;  %1409 = vmatpush1.bf16.msra.mxu0 %v2587_v16  ;;  %v2674_v16 = vld [vmem:[#allocation5 + $0x2e8] ss:$16 sps:$4 sm:$0xff]  }
  0x8a   :  { %1487 = vmatpush1.bf16.msra.mxu1 %v2584_v15  ;;  %1410 = vmatprep.subr.bf16.mxu0 %v2596_v19  ;;  %v2671_v15 = vld [vmem:[#allocation5 + $0x128] ss:$16 sps:$4 sm:$0xff]   ;;  %v2682_v19 = vld [vmem:[#allocation5 + $0x2cc] ss:$16 sps:$4 sm:$0xff]  }
  0x8b   :  { %1488 = vmatprep.subr.bf16.mxu1 %v2593_v18  ;;  %1518 = vmatprep.mubr.bf16.mxu1 %v3022_v47  ;;  %v2630_v47 = vld [vmem:[#allocation5 + $0x5c0] ss:$16 sps:$4 sm:$0xff]   ;;  %v2679_v18 = vld [vmem:[#allocation5 + $0x10c] ss:$16 sps:$4 sm:$0xff]  }
  0x8d   :  { %1411 = vmatpush1.bf16.msra.mxu0 %v2594_v21  ;;  %v2680_v21 = vld [vmem:[#allocation5 + $0x2c8] ss:$16 sps:$4 sm:$0xff]  }
  0x8e   :  { %1489 = vmatpush1.bf16.msra.mxu1 %v2591_v20  ;;  %1412 = vmatprep.subr.bf16.mxu0 %v2602_v23  ;;  %v2677_v20 = vld [vmem:[#allocation5 + $0x108] ss:$16 sps:$4 sm:$0xff]   ;;  %v2688_v23 = vld [vmem:[#allocation5 + $0x2ac] ss:$16 sps:$4 sm:$0xff]  }
  0x8f   :  { %1490 = vmatprep.subr.bf16.mxu1 %v2599_v22  ;;  %v2685_v22 = vld [vmem:[#allocation5 + $0x4ec] ss:$16 sps:$4 sm:$0xff]  }
  0x91   :  { %1413 = vmatpush1.bf16.msra.mxu0 %v2600_v25  ;;  %v2686_v25 = vld [vmem:[#allocation5 + $0x2a8] ss:$16 sps:$4 sm:$0xff]  }
  0x92   :  { %1491 = vmatpush1.bf16.msra.mxu1 %v2597_v24  ;;  %1414 = vmatprep.subr.bf16.mxu0 %v2608_v27  ;;  %v2683_v24 = vld [vmem:[#allocation5 + $0x4e8] ss:$16 sps:$4 sm:$0xff]   ;;  %v2694_v27 = vld [vmem:[#allocation5 + $0x28c] ss:$16 sps:$4 sm:$0xff]  }
  0x93   :  { %1492 = vmatprep.subr.bf16.mxu1 %v2605_v26  ;;  %v2691_v26 = vld [vmem:[#allocation5 + $0x4cc] ss:$16 sps:$4 sm:$0xff]  }
  0x95   :  { %1415 = vmatpush1.bf16.msra.mxu0 %v2606_v29  ;;  %v2692_v29 = vld [vmem:[#allocation5 + $0x288] ss:$16 sps:$4 sm:$0xff]  }
  0x96   :  { %1493 = vmatpush1.bf16.msra.mxu1 %v2603_v28  ;;  %1416 = vmatprep.subr.bf16.mxu0 %v2614_v31  ;;  %v2689_v28 = vld [vmem:[#allocation5 + $0x4c8] ss:$16 sps:$4 sm:$0xff]   ;;  %v2700_v31 = vld [vmem:[#allocation5 + $0x26c] ss:$16 sps:$4 sm:$0xff]  }
  0x97   :  { %1494 = vmatprep.subr.bf16.mxu1 %v2611_v30  ;;  %v2697_v30 = vld [vmem:[#allocation5 + $0x4ac] ss:$16 sps:$4 sm:$0xff]  }
  0x99   :  { %1417 = vmatpush1.bf16.msra.mxu0 %v2612_v35  ;;  %v2706_v35 = vld [vmem:[#allocation5 + $0x24c] ss:$16 sps:$4 sm:$0xff]  }
  0x9a   :  { %1495 = vmatpush1.bf16.msra.mxu1 %v2609_v34  ;;  %1418 = vmatprep.subr.bf16.mxu0 %v2620_v37  ;;  %v2698_v34 = vld [vmem:[#allocation5 + $0x268] ss:$16 sps:$4 sm:$0xff]  }
  0x9b   :  { %1496 = vmatprep.subr.bf16.mxu1 %v2617_v36  ;;  %v2701_v36 = vld [vmem:[#allocation5 + $0x488] ss:$16 sps:$4 sm:$0xff]  }
  0x9c   :  { %v2704_v37 = vld [vmem:[#allocation5 + $0x248] ss:$16 sps:$4 sm:$0xff]  }
  0x9d   :  { %1419 = vmatpush1.bf16.msra.mxu0 %v2618_v39  ;;  %v2707_v39 = vld [vmem:[#allocation5 + $0x468] ss:$16 sps:$4 sm:$0xff]  }
  0x9e   :  { %1497 = vmatpush1.bf16.msra.mxu1 %v2615_v38  ;;  %1420 = vmatprep.subr.bf16.mxu0 %v2626_v41  ;;  %v2709_v38 = vld [vmem:[#allocation5 + $0x46c] ss:$16 sps:$4 sm:$0xff]  }
  0x9f   :  { %1498 = vmatprep.subr.bf16.mxu1 %v2623_v40  ;;  %v2710_v40 = vld [vmem:[#allocation5 + $0x228] ss:$16 sps:$4 sm:$0xff]   ;;  %v2715_v41 = vld [vmem:[#allocation5 + $0x44c] ss:$16 sps:$4 sm:$0xff]  }
  0xa1   :  { %1421 = vmatpush2.bf16.msra.mxu0 %v2624_v43  ;;  %v2716_v43 = vld [vmem:[#allocation5 + $0x208] ss:$16 sps:$4 sm:$0xff]  }
  0xa2   :  { %1499 = vmatpush1.bf16.msra.mxu1 %v2621_v42  ;;  %1422 = vmatprep.subr.bf16.mxu0 %v2632_v45  ;;  %v2718_v42 = vld [vmem:[#allocation5 + $0x20c] ss:$16 sps:$4 sm:$0xff]  }
  0xa3   :  { %1500 = vmatprep.subr.bf16.mxu1 %v2629_v44  ;;  %v2721_v44 = vld [vmem:[#allocation5 + $0x42c] ss:$16 sps:$4 sm:$0xff]  }
  0xa4   :  { %v2724_v45 = vld [vmem:[#allocation5 + $0x3ec] ss:$16 sps:$4 sm:$0xff]  }
  0xa5   :  { %1423 = vmatpush2.bf16.msra.mxu0 %v2630_v47  ;;  %v2722_v47 = vld [vmem:[#allocation5 + $0x3e8] ss:$16 sps:$4 sm:$0xff]  }
  0xa6   :  { %1501 = vmatpush1.bf16.msra.mxu1 %v2627_v46  ;;  %1424 = vmatprep.subr.bf16.mxu0 %v2638_v49  ;;  %v2719_v46 = vld [vmem:[#allocation5 + $0x428] ss:$16 sps:$4 sm:$0xff]   ;;  %v2730_v49 = vld [vmem:[#allocation5 + $0x3cc] ss:$16 sps:$4 sm:$0xff]  }
  0xa7   :  { %1502 = vmatprep.subr.bf16.mxu1 %v2635_v48  ;;  %v2727_v48 = vld [vmem:[#allocation5 + $0x40c] ss:$16 sps:$4 sm:$0xff]  }
  0xa9   :  { %1425 = vmatpush2.bf16.msra.mxu0 %v2636_v52  ;;  %v2728_v52 = vld [vmem:[#allocation5 + $0x3c8] ss:$16 sps:$4 sm:$0xff]  }
  0xaa   :  { %1503 = vmatpush2.bf16.msra.mxu1 %v2633_v50  ;;  %1426 = vmatprep.subr.bf16.mxu0 %v2644_v54  ;;  %v2725_v50 = vld [vmem:[#allocation5 + $0x408] ss:$16 sps:$4 sm:$0xff]   ;;  %v2736_v54 = vld [vmem:[#allocation5 + $0x3ac] ss:$16 sps:$4 sm:$0xff]  }
  0xab   :  { %1504 = vmatprep.subr.bf16.mxu1 %v2641_v53  ;;  %v2733_v53 = vld [vmem:[#allocation5 + $0x5ec] ss:$16 sps:$4 sm:$0xff]  }
  0xad   :  { %1427 = vmatpush2.bf16.msra.mxu0 %v2642_v56  ;;  %v2734_v56 = vld [vmem:[#allocation5 + $0x3a8] ss:$16 sps:$4 sm:$0xff]  }
  0xae   :  { %1505 = vmatpush2.bf16.msra.mxu1 %v2639_v55  ;;  %1428 = vmatprep.subr.bf16.mxu0 %v2650_v58  ;;  %v2731_v55 = vld [vmem:[#allocation5 + $0x5e8] ss:$16 sps:$4 sm:$0xff]   ;;  %v2742_v58 = vld [vmem:[#allocation5 + $0x38c] ss:$16 sps:$4 sm:$0xff]  }
  0xaf   :  { %1506 = vmatprep.subr.bf16.mxu1 %v2647_v57  ;;  %v2739_v57 = vld [vmem:[#allocation5 + $0x5cc] ss:$16 sps:$4 sm:$0xff]  }
  0xb1   :  { %1429 = vmatpush2.bf16.msra.mxu0 %v2648_v60  ;;  %v2740_v60 = vld [vmem:[#allocation5 + $0x388] ss:$16 sps:$4 sm:$0xff]  }
  0xb2   :  { %1507 = vmatpush2.bf16.msra.mxu1 %v2645_v59  ;;  %1430 = vmatprep.subr.bf16.mxu0 %v2656_v62  ;;  %v2737_v59 = vld [vmem:[#allocation5 + $0x5c8] ss:$16 sps:$4 sm:$0xff]   ;;  %v2748_v62 = vld [vmem:[#allocation5 + $0x36c] ss:$16 sps:$4 sm:$0xff]  }
  0xb3   :  { %1508 = vmatprep.subr.bf16.mxu1 %v2653_v61  ;;  %v2745_v61 = vld [vmem:[#allocation5 + $0x5ac] ss:$16 sps:$4 sm:$0xff]  }
  0xb5   :  { %1431 = vmatpush2.bf16.msra.mxu0 %v2654_v0  ;;  %v2746_v0 = vld [vmem:[#allocation5 + $0x368] ss:$16 sps:$4 sm:$0xff]  }
  0xb6   :  { %1509 = vmatpush2.bf16.msra.mxu1 %v2651_v63  ;;  %1432 = vmatprep.subr.bf16.mxu0 %v2662_v2  ;;  %v2743_v63 = vld [vmem:[#allocation5 + $0x5a8] ss:$16 sps:$4 sm:$0xff]   ;;  %v2754_v2 = vld [vmem:[#allocation5 + $0x34c] ss:$16 sps:$4 sm:$0xff]  }
  0xb7   :  { %1510 = vmatprep.subr.bf16.mxu1 %v2659_v1  ;;  %v2751_v1 = vld [vmem:[#allocation5 + $0x58c] ss:$16 sps:$4 sm:$0xff]  }
  0xb9   :  { %1433 = vmatpush2.bf16.msra.mxu0 %v2660_v4  ;;  %v2752_v4 = vld [vmem:[#allocation5 + $0x348] ss:$16 sps:$4 sm:$0xff]  }
  0xba   :  { %1511 = vmatpush2.bf16.msra.mxu1 %v2657_v3  ;;  %1434 = vmatprep.subr.bf16.mxu0 %v2668_v8  ;;  %v2749_v3 = vld [vmem:[#allocation5 + $0x588] ss:$16 sps:$4 sm:$0xff]   ;;  %v2760_v8 = vld [vmem:[#allocation5 + $0x32c] ss:$16 sps:$4 sm:$0xff]  }
  0xbb   :  { %1512 = vmatprep.subr.bf16.mxu1 %v2665_v5  ;;  %v2757_v5 = vld [vmem:[#allocation5 + $0x56c] ss:$16 sps:$4 sm:$0xff]  }
  0xbd   :  { %1435 = vmatpush2.bf16.msra.mxu0 %v2666_v10  ;;  %v2758_v10 = vld [vmem:[#allocation5 + $0x328] ss:$16 sps:$4 sm:$0xff]  }
  0xbe   :  { %1513 = vmatpush2.bf16.msra.mxu1 %v2663_v9  ;;  %1527 = vmatprep.subr.bf16.mxu0 %v2676_v12  ;;  %v2755_v9 = vld [vmem:[#allocation5 + $0x568] ss:$16 sps:$4 sm:$0xff]   ;;  %v2766_v12 = vld [vmem:[#allocation5 + $0x30c] ss:$16 sps:$4 sm:$0xff]  }
  0xbf   :  { %1514 = vmatprep.subr.bf16.mxu1 %v2673_v11  ;;  %v2763_v11 = vld [vmem:[#allocation5 + $0x54c] ss:$16 sps:$4 sm:$0xff]  }
  0xc0   :  { %1437 = vmatmul.mubr.bf16.vlgmr.msra.gmra.mxu0 %v3049_v14 }
  0xc1   :  { %1528 = vmatpush1.bf16.msra.mxu0 %v2674_v16  ;;  %1559 = vmatprep.mubr.bf16.mxu0 %v3024_v51  ;;  %v2703_v51 = vld [vmem:[#allocation5 + $0x48c] ss:$16 sps:$4 sm:$0xff]   ;;  %v2764_v16 = vld [vmem:[#allocation5 + $0x308] ss:$16 sps:$4 sm:$0xff]  }
  0xc2   :  { %1515 = vmatpush2.bf16.msra.mxu1 %v2671_v15  ;;  %1529 = vmatprep.subr.bf16.mxu0 %v2682_v19  ;;  %v2761_v15 = vld [vmem:[#allocation5 + $0x548] ss:$16 sps:$4 sm:$0xff]   ;;  %v2776_v19 = vld [vmem:[#allocation8 + $0x78] sm:$0xff]  }
  0xc3   :  { %1516 = vmatprep.subr.bf16.mxu1 %v2679_v18  ;;  %v2769_v18 = vld [vmem:[#allocation5 + $0x52c] ss:$16 sps:$4 sm:$0xff]  }
  0xc5   :  { %1530 = vmatpush1.bf16.msra.mxu0 %v2680_v21  ;;  %v2777_v21 = vld [vmem:[#allocation8 + $0x38] sm:$0xff]  }
  0xc6   :  { %1517 = vmatpush2.bf16.msra.mxu1 %v2677_v20  ;;  %1531 = vmatprep.subr.bf16.mxu0 %v2688_v23  ;;  %v2767_v20 = vld [vmem:[#allocation5 + $0x528] ss:$16 sps:$4 sm:$0xff]  }
  0xc7   :  { %1568 = vmatprep.subr.bf16.mxu1 %v2685_v22  ;;  %v2772_v22 = vld [vmem:[#allocation5 + $0x50c] ss:$16 sps:$4 sm:$0xff]   ;;  %v2778_v23 = vld [vmem:[#allocation8 + $0x70] sm:$0xff]  }
  0xc9   :  { %1519 = vmatmul.mubr.bf16.vlgmr.msra.gmra.mxu1 %v3028_v6  ;;  %1532 = vmatpush1.bf16.msra.mxu0 %v2686_v25  ;;  %v2712_v6 = vld [vmem:[#allocation5 + $0x22c] ss:$16 sps:$4 sm:$0xff]   ;;  %v2779_v25 = vld [vmem:[#allocation8 + $0x30] sm:$0xff]  }
  0xca   :  { %1569 = vmatpush1.bf16.msra.mxu1 %v2683_v24  ;;  %1533 = vmatprep.subr.bf16.mxu0 %v2694_v27  ;;  %v2770_v24 = vld [vmem:[#allocation5 + $0x508] ss:$16 sps:$4 sm:$0xff]   ;;  %v2780_v27 = vld [vmem:[#allocation8 + $0x68] sm:$0xff]  }
  0xcb   :  { %1570 = vmatprep.subr.bf16.mxu1 %v2691_v26  ;;  %1600 = vmatprep.mubr.bf16.mxu1 %v3044_v33  ;;  %v2713_v33 = vld [vmem:[#allocation5 + $0x448] ss:$16 sps:$4 sm:$0xff]   ;;  %v2775_v26 = vld [vmem:[#allocation5 + $0x60c] ss:$16 sps:$4 sm:$0xff]  }
  0xcd   :  { %1534 = vmatpush1.bf16.msra.mxu0 %v2692_v29  ;;  %v2781_v29 = vld [vmem:[#allocation8 + $0x28] sm:$0xff]  }
  0xce   :  { %1571 = vmatpush1.bf16.msra.mxu1 %v2689_v28  ;;  %1535 = vmatprep.subr.bf16.mxu0 %v2700_v31  ;;  %v2773_v28 = vld [vmem:[#allocation5 + $0x608] ss:$16 sps:$4 sm:$0xff]   ;;  %v2784_v31 = vld [vmem:[#allocation8 + $0x58] sm:$0xff]  }
  0xcf   :  { %1572 = vmatprep.subr.bf16.mxu1 %v2697_v30  ;;  %v2782_v30 = vld [vmem:[#allocation8 + $0x60] sm:$0xff]  }
  0xd1   :  { %1536 = vmatpush1.bf16.msra.mxu0 %v2698_v34  ;;  %v2792_v34 = vld [vmem:[#allocation8 + $0xf8] sm:$0xff]  }
  0xd2   :  { %1573 = vmatpush1.bf16.msra.mxu1 %v2695_v32  ;;  %1537 = vmatprep.subr.bf16.mxu0 %v2706_v35  ;;  %v2785_v32 = vld [vmem:[#allocation8 + $0x18] sm:$0xff]   ;;  %v2794_v35 = vld [vmem:[#allocation8 + $0xf0] sm:$0xff]  }
  0xd3   :  { %1574 = vmatprep.subr.bf16.mxu1 %v2703_v51  ;;  %v2793_v51 = vld [vmem:[#allocation8 + $0xb8] sm:$0xff]  }
  0xd5   :  { %1538 = vmatpush1.bf16.msra.mxu0 %v2704_v37  ;;  %v2787_v37 = vld [vmem:[#allocation8 + $0x10] sm:$0xff]  }
  0xd6   :  { %1575 = vmatpush1.bf16.msra.mxu1 %v2701_v36  ;;  %1539 = vmatprep.subr.bf16.mxu0 %v2712_v6  ;;  %v2786_v36 = vld [vmem:[#allocation8 + $0x50] sm:$0xff]   ;;  %v2790_v6 = vld [vmem:[#allocation8 + $0x40] sm:$0xff]  }
  0xd7   :  { %1576 = vmatprep.subr.bf16.mxu1 %v2709_v38  ;;  %v2789_v38 = vld [vmem:[#allocation8 + $0x8] sm:$0xff]  }
  0xd9   :  { %1540 = vmatpush1.bf16.msra.mxu0 %v2710_v40 }
  0xda   :  { %1577 = vmatpush1.bf16.msra.mxu1 %v2707_v39  ;;  %1541 = vmatprep.subr.bf16.mxu0 %v2718_v42  ;;  %v2791_v39 = vld [vmem:[#allocation8] sm:$0xff]   ;;  %v2797_v42 = vld [vmem:[#allocation8 + $0xa8] sm:$0xff]  }
  0xdb   :  { %1578 = vmatprep.subr.bf16.mxu1 %v2715_v41 }
  0xdd   :  { %1542 = vmatpush1.bf16.msra.mxu0 %v2716_v43 }
  0xde   :  { %1579 = vmatpush1.bf16.msra.mxu1 %v2713_v33  ;;  %1543 = vmatprep.subr.bf16.mxu0 %v2724_v45  ;;  %v2799_v45 = vld [vmem:[#allocation8 + $0xa0] sm:$0xff]  }
  0xdf   :  { %1580 = vmatprep.subr.bf16.mxu1 %v2721_v44  ;;  %v2798_v44 = vld [vmem:[#allocation8 + $0xe0] sm:$0xff]  }
  0xe1   :  { %1544 = vmatpush2.bf16.msra.mxu0 %v2722_v47 }
  0xe2   :  { %1581 = vmatpush1.bf16.msra.mxu1 %v2719_v46  ;;  %1545 = vmatprep.subr.bf16.mxu0 %v2730_v49 }
  0xe3   :  { %1582 = vmatprep.subr.bf16.mxu1 %v2727_v48 }
  0xe5   :  { %1546 = vmatpush2.bf16.msra.mxu0 %v2728_v52  ;;  %v2800_v52 = vld [vmem:[#allocation8 + $0xd8] sm:$0xff]  }
  0xe6   :  { %1583 = vmatpush1.bf16.msra.mxu1 %v2725_v50  ;;  %1547 = vmatprep.subr.bf16.mxu0 %v2736_v54 }
  0xe7   :  { %1584 = vmatprep.subr.bf16.mxu1 %v2733_v53  ;;  %v2801_v53 = vld [vmem:[#allocation8 + $0x98] sm:$0xff]  }
  0xe9   :  { %1548 = vmatpush2.bf16.msra.mxu0 %v2734_v56  ;;  %v2802_v56 = vld [vmem:[#allocation8 + $0xd0] sm:$0xff]  }
  0xea   :  { %1585 = vmatpush2.bf16.msra.mxu1 %v2731_v55  ;;  %1549 = vmatprep.subr.bf16.mxu0 %v2742_v58 }
  0xeb   :  { %1586 = vmatprep.subr.bf16.mxu1 %v2739_v57  ;;  %v2803_v57 = vld [vmem:[#allocation8 + $0x90] sm:$0xff]  }
  0xed   :  { %1550 = vmatpush2.bf16.msra.mxu0 %v2740_v60  ;;  %v2805_v60 = vld [vmem:[#allocation8 + $0x88] sm:$0xff]  }
  0xee   :  { %1587 = vmatpush2.bf16.msra.mxu1 %v2737_v59  ;;  %1551 = vmatprep.subr.bf16.mxu0 %v2748_v62  ;;  %v2804_v59 = vld [vmem:[#allocation8 + $0xc8] sm:$0xff]   ;;  %v2807_v62 = vld [vmem:[#allocation8 + $0x80] sm:$0xff]  }
  0xef   :  { %1588 = vmatprep.subr.bf16.mxu1 %v2745_v61  ;;  %v2806_v61 = vld [vmem:[#allocation8 + $0xc0] sm:$0xff]  }
  0xf1   :  { %1552 = vmatpush2.bf16.msra.mxu0 %v2746_v0 }
  0xf2   :  { %1589 = vmatpush2.bf16.msra.mxu1 %v2743_v63  ;;  %1553 = vmatprep.subr.bf16.mxu0 %v2754_v2  ;;  %v294_v63 = vlaneseq  ;;  %v292_v2 = vld [vmem:[#allocation7] sm:$0xf] }
  0xf3   :  { %1590 = vmatprep.subr.bf16.mxu1 %v2751_v1 }
  0xf4   :  { %v295_v0 = vshrl.u32 %v294_v63, 7 }
  0xf5   :  { %1554 = vmatpush2.bf16.msra.mxu0 %v2752_v4 }
  0xf6   :  { %1591 = vmatpush2.bf16.msra.mxu1 %v2749_v3  ;;  %1555 = vmatprep.subr.bf16.mxu0 %v2760_v8  ;;  %v296_v1 = vsub.s32 0, %v295_v0  ;;  %v300_v3 = vsub.s32 1, %v295_v0 }
  0xf7   :  { %1592 = vmatprep.subr.bf16.mxu1 %v2757_v5 }
  0xf8   :  { %v297_v4 = vrot.slane %v292_v2, %v296_v1  ;;  %v301_v5 = vrot.slane %v292_v2, %v300_v3 }
  0xf9   :  { %1556 = vmatpush2.bf16.msra.mxu0 %v2758_v10 }
  0xfa   :  { %1593 = vmatpush2.bf16.msra.mxu1 %v2755_v9  ;;  %1557 = vmatprep.subr.bf16.mxu0 %v2766_v12 }
  0xfb   :  { %1594 = vmatprep.subr.bf16.mxu1 %v2763_v11 }
  0xfd   :  { %1558 = vmatpush2.bf16.msra.mxu0 %v2764_v16 }
  0xfe   :  { %1595 = vmatpush2.bf16.msra.mxu1 %v2761_v15  ;;  %2389 = vmatprep.subr.bf16.mxu0 %v2776_v19 }
  0xff   :  { %1596 = vmatprep.subr.bf16.mxu1 %v2769_v18 }
 0x100   :  { %1560 = vmatmul.mubr.bf16.vlgmr.msra.gmra.mxu0 %v3030_v7  ;;  %v2783_v7 = vld [vmem:[#allocation8 + $0x20] sm:$0xff]  }
 0x101   :  { %2390 = vmatpush3.bf16.msra.mxu0 %v2777_v21 }
 0x102   :  { %1597 = vmatpush2.bf16.msra.mxu1 %v2767_v20  ;;  %2391 = vmatprep.subr.bf16.mxu0 %v2778_v23 }
 0x103   :  { %1598 = vmatprep.subr.bf16.mxu1 %v2772_v22 }
 0x105   :  { %2392 = vmatpush3.bf16.msra.mxu0 %v2779_v25 }
 0x106   :  { %1599 = vmatpush2.bf16.msra.mxu1 %v2770_v24  ;;  %2393 = vmatprep.subr.bf16.mxu0 %v2780_v27 }
 0x107   :  { %1623 = vmatprep.subr.bf16.mxu1 %v2775_v26 }
 0x109   :  { %1601 = vmatmul.mubr.bf16.vlgmr.msra.gmra.mxu1 %v3049_v14  ;;  %2394 = vmatpush3.bf16.msra.mxu0 %v2781_v29  ;;  %v2795_v14 = vld [vmem:[#allocation8 + $0xb0] sm:$0xff]  }
 0x10a   :  { %1624 = vmatpush1.bf16.msra.mxu1 %v2773_v28  ;;  %1641 = vmatprep.mubr.bf16.mxu1 %v2957_v13  ;;  %v2788_v13 = vld [vmem:[#allocation8 + $0x48] sm:$0xff]  }
 0x10b   :  { %2395 = vmatprep.subr.bf16.mxu0 %v2782_v30  ;;  %2411 = vmatprep.subr.bf16.mxu1 %v2792_v34 }
 0x10d   :  { %2396 = vmatpush3.bf16.msra.mxu0 %v2783_v7 }
 0x10e   :  { %2397 = vmatprep.subr.bf16.mxu0 %v2784_v31 }
 0x111   :  { %2346 = vmatmul.mubr.msk.bf16.vlgmr.msra.gmra.mxu1 %vm1318_vm0, %v3035_v17  ;;  %2398 = vmatpush3.bf16.msra.mxu0 %v2785_v32  ;;  %v2796_v17 = vld [vmem:[#allocation8 + $0xe8] sm:$0xff]   ;;  %v304_v32 = vsub.s32 2, %v295_v0 }
 0x112   :  { %2412 = vmatpush3.bf16.msra.mxu1 %v2793_v51  ;;  %2399 = vmatprep.subr.bf16.mxu0 %v2786_v36  ;;  %v308_v51 = vsub.s32 3, %v295_v0 }
 0x113   :  { %2413 = vmatprep.subr.bf16.mxu1 %v2794_v35  ;;  %v305_v36 = vrot.slane %v292_v2, %v304_v32 }
 0x115   :  { %2400 = vmatpush3.bf16.msra.mxu0 %v2787_v37  ;;  %v309_v37 = vrot.slane %v292_v2, %v308_v51 }
 0x116   :  { %2414 = vmatpush3.bf16.msra.mxu1 %v2795_v14  ;;  %2401 = vmatprep.subr.bf16.mxu0 %v2788_v13 }
 0x117   :  { %2415 = vmatprep.subr.bf16.mxu1 %v2796_v17 }
 0x119   :  { %2402 = vmatpush3.bf16.msra.mxu0 %v2789_v38 }
 0x11a   :  { %2403 = vmatprep.subr.bf16.mxu0 %v2790_v6  ;;  %2416 = vmatpush3.bf16.msra.mxu1 %v2797_v42 }
 0x11b   :  { %2417 = vmatprep.subr.bf16.mxu1 %v2798_v44 }
 0x11d   :  { %2404 = vmatpush3.bf16.msra.mxu0 %v2791_v39 }
 0x11e   :  { %2418 = vmatpush3.bf16.msra.mxu1 %v2799_v45 }
 0x11f   :  { %2419 = vmatprep.subr.bf16.mxu1 %v2800_v52  ;;  %v2809_v52 = vld [vmem:[#allocation10 + $0x30] sm:$0xff]  }
 0x122   :  { %2420 = vmatpush3.bf16.msra.mxu1 %v2801_v53 }
 0x123   :  { %2421 = vmatprep.subr.bf16.mxu1 %v2802_v56 }
 0x126   :  { %2422 = vmatpush3.bf16.msra.mxu1 %v2803_v57  ;;  %v2810_v57 = vld [vmem:[#allocation10 + $0x28] sm:$0xff]  }
 0x127   :  { %2423 = vmatprep.subr.bf16.mxu1 %v2804_v59  ;;  %v2812_v59 = vld [vmem:[#allocation10 + $0x18] sm:$0xff]  }
 0x12a   :  { %2424 = vmatpush3.bf16.msra.mxu1 %v2805_v60  ;;  %v2813_v60 = vld [vmem:[#allocation10 + $0x10] sm:$0xff]  }
 0x12b   :  { %2425 = vmatprep.subr.bf16.mxu1 %v2806_v61  ;;  %v2814_v61 = vld [vmem:[#allocation10 + $0x8] sm:$0xff]  }
 0x12e   :  { %2426 = vmatpush3.bf16.msra.mxu1 %v2807_v62  ;;  %v2815_v62 = vld [vmem:[#allocation10] sm:$0xff]  }
 0x140   :  { %v1356_v40 = vpop.f32.mrf.mxu0 }
 0x141   :  { %v1397_v41 = vpop.f32.mrf.mxu1  ;;  %v1357_v8 = vadd.f32 %v1356_v40, %v297_v4  ;;  %v2347_v4 = vld [vmem:[%s3073_s4] ss:$0 sm:$0xff]  ;;  %s2960_s4 = smov [#allocation11]  }
 0x142   :  { %v1358_v33 = vpop.f32.mrf.mxu0  ;;  %s2131_s29 = sshll.u32 %s2960_s4, 4  ;;  %s2132_s29 = int_to_ptr.vmem [resolvable:$true] %s2131_s29 }
 0x143   :  { %v1399_v43 = vpop.f32.mrf.mxu1  ;;  %v1359_v9 = vadd.f32 %v1358_v33, %v301_v5  ;;  %v1398_v10 = vadd.f32 %v1397_v41, %v1357_v8  ;;  %p2925_p12 = scmp.lt.s32.totalorder %s2132_s29, %s2132_s29 }
 0x144   :  { %v1360_v47 = vpop.f32.mrf.mxu0 }
 0x145   :  { %v1401_v46 = vpop.f32.mrf.mxu1  ;;  %v1400_v12 = vadd.f32 %v1399_v43, %v1359_v9 }
 0x146   :  { %v1361_v49 = vpop.f32.mrf.mxu0  ;;  %v2808_v46 = vld [vmem:[#allocation10 + $0x38] sm:$0xff]  }
 0x147   :  { %v1402_v48 = vpop.f32.mrf.mxu1 }
 0x148   :  { %v2958_v48 = vmov 0.0  }
 0x149   :  { %v1479_v50 = vpop.f32.mrf.mxu1  ;;  %2442 = vmatprep.subr.bf16.mxu0 %v2958_v48 }
 0x14b   :  { %v1481_v54 = vpop.f32.mrf.mxu1 }
 0x14d   :  { %v1483_v55 = vpop.f32.mrf.mxu1 }
 0x14f   :  { %v1484_v58 = vpop.f32.mrf.mxu1 }
 0x150   :  { %v2811_v58 = vld [vmem:[#allocation10 + $0x20] sm:$0xff]  }
 0x180   :  { %v1438_v11 = vpop.f32.mrf.mxu0 }
 0x181   :  { %v1439_v15 = vadd.f32 %v1438_v11, %v1398_v10 }
 0x182   :  { %v1440_v16 = vpop.f32.mrf.mxu0 }
 0x183   :  { %v1480_v18 = vadd.f32 %v1479_v50, %v1439_v15  ;;  %v1441_v19 = vadd.f32 %v1440_v16, %v1400_v12 }
 0x184   :  { %v1442_v20 = vpop.f32.mrf.mxu0 }
 0x185   :  { %v1482_v21 = vadd.f32 %v1481_v54, %v1441_v19  ;;  %v1650_v22 = vmax.f32 %v1480_v18, 0.0  ;;  %v2380_v19 = vld [vmem:[%s3075_s6] ss:$0 sm:$0xff]  ;;  %s2920_s6 = scalar_lea.vmem %s2132_s29, 128 }
 0x186   :  { %v1443_v23 = vpop.f32.mrf.mxu0  ;;  %p2921_p11 = scmp.ne.s32.totalorder %s2132_s29, %s2920_s6  ;;  %p2926_p13 = scmp.lt.s32.totalorder %s2920_s6, %s2920_s6 }
 0x187   :  { %v1651_v24 = vmax.f32 %v1482_v21, 0.0  ;;  %v1654_v27 = vpack.c.bf16 %v1650_v22, %v1650_v22 }
 0x188   :  { %p2927_p0 = por %p2926_p13, %p2925_p12 }
 0x189   :  { %v1520_v25 = vpop.f32.mrf.mxu1  ;;  %v1655_v26 = vpack.c.bf16 %v1651_v24, %v1651_v24 }
 0x18a   :  { %v1521_v38 = vadd.f32 %v1520_v25, %v305_v36  ;;  %p2928_p1 = pnand %p2927_p0, %p2921_p11 }
 0x18b   :  { %v1522_v28 = vpop.f32.mrf.mxu1  ;;  %1953 = vmatprep.mubr.bf16.mxu0 %v1655_v26 }
 0x18c   :  { %1954 = vmatmul.mubr.bf16.vlgmr.msra.gmra.mxu0 %v1654_v27  ;;  %v1523_v39 = vadd.f32 %v1522_v28, %v309_v37 }
 0x18d   :  { %v1524_v29 = vpop.f32.mrf.mxu1  ;;  %2443 = vmatpush3.bf16.msra.mxu0 %v2808_v46  ;;  %2458 = vmatprep.mubr.msk.bf16.mxu0 %vm2959_vm1, %v2958_v48 }
 0x18e   :  { %2444 = vmatprep.subr.bf16.mxu0 %v2958_v48 }
 0x18f   :  { %v1525_v30 = vpop.f32.mrf.mxu1 }
 0x191   :  { %2445 = vmatpush3.bf16.msra.mxu0 %v2809_v52 }
 0x192   :  { %2446 = vmatprep.subr.bf16.mxu0 %v2958_v48 }
 0x195   :  { %2447 = vmatpush3.bf16.msra.mxu0 %v2810_v57 }
 0x196   :  { %2448 = vmatprep.subr.bf16.mxu0 %v2958_v48 }
 0x199   :  { %2449 = vmatpush3.bf16.msra.mxu0 %v2811_v58 }
 0x19a   :  { %2450 = vmatprep.subr.bf16.mxu0 %v2958_v48 }
 0x19d   :  { %2451 = vmatpush3.bf16.msra.mxu0 %v2812_v59 }
 0x19e   :  { %2452 = vmatprep.subr.bf16.mxu0 %v2958_v48 }
 0x1a1   :  { %2453 = vmatpush3.bf16.msra.mxu0 %v2813_v60 }
 0x1a2   :  { %2454 = vmatprep.subr.bf16.mxu0 %v2958_v48 }
 0x1a5   :  { %2455 = vmatpush3.bf16.msra.mxu0 %v2814_v61 }
 0x1a6   :  { %2456 = vmatprep.subr.bf16.mxu0 %v2958_v48 }
 0x1a9   :  { %2457 = vmatpush3.bf16.msra.mxu0 %v2815_v62 }
 0x1c0   :  { %v1561_v7 = vpop.f32.mrf.mxu0 }
 0x1c1   :  { %v1562_v40 = vadd.f32 %v1561_v7, %v1521_v38 }
 0x1c2   :  { %v1563_v31 = vpop.f32.mrf.mxu0 }
 0x1c3   :  { %v1564_v17 = vadd.f32 %v1563_v31, %v1523_v39 }
 0x1c4   :  { %v1565_v34 = vpop.f32.mrf.mxu0 }
 0x1c6   :  { %v1566_v35 = vpop.f32.mrf.mxu0 }
 0x1c9   :  { %v1602_v14 = vpop.f32.mrf.mxu1 }
 0x1ca   :  { %v1603_v42 = vadd.f32 %v1602_v14, %v1562_v40 }
 0x1cb   :  { %v1604_v13 = vpop.f32.mrf.mxu1 }
 0x1cc   :  { %v1605_v43 = vadd.f32 %v1604_v13, %v1564_v17 }
 0x1cd   :  { %v1606_v6 = vpop.f32.mrf.mxu1 }
 0x1cf   :  { %v1607_v41 = vpop.f32.mrf.mxu1 }
 0x1d1   :  { %v1643_v33 = vpop.f32.mrf.mxu1 }
 0x1d2   :  { %v1644_v44 = vadd.f32 %v1643_v33, %v1603_v42 }
 0x1d3   :  { %v1645_v45 = vpop.f32.mrf.mxu1 }
 0x1d4   :  { %v1646_v47 = vadd.f32 %v1645_v45, %v1605_v43  ;;  %v1652_v49 = vmax.f32 %v1644_v44, 0.0 }
 0x1d5   :  { %v1647_v50 = vpop.f32.mrf.mxu1 }
 0x1d6   :  { %v1653_v53 = vmax.f32 %v1646_v47, 0.0  ;;  %v1656_v56 = vpack.c.bf16 %v1652_v49, %v1652_v49 }
 0x1d7   :  { %v1648_v54 = vpop.f32.mrf.mxu1 }
 0x1d8   :  { %v1657_v55 = vpack.c.bf16 %v1653_v53, %v1653_v53 }
 0x1da   :  { %1993 = vmatprep.mubr.bf16.mxu1 %v1657_v55 }
 0x1db   :  { %1994 = vmatmul.mubr.bf16.vlgmr.msra.gmra.mxu1 %v1656_v56 }
 0x24c   :  { %v2405_v63 = vpop.f32.mrf.mxu0 }
 0x24e   :  { %v2406_v0 = vpop.f32.mrf.mxu0 }
 0x24f   :  { %v2407_v1 = vadd.f32 %v2406_v0, %v2405_v63 }
 0x250   :  { %v2408_v2 = vpop.f32.mrf.mxu0 }
 0x251   :  { %v1956_v9 = vadd.f32 %v2407_v1, %v2347_v4 }
 0x252   :  { %v2409_v3 = vpop.f32.mrf.mxu0 }
 0x29b   :  { %v2427_v5 = vpop.f32.mrf.mxu1 }
 0x29d   :  { %v2428_v8 = vpop.f32.mrf.mxu1 }
 0x29e   :  { %v2429_v10 = vadd.f32 %v2428_v8, %v2427_v5 }
 0x29f   :  { %v2430_v11 = vpop.f32.mrf.mxu1 }
 0x2a0   :  { %v1996_v12 = vadd.f32 %v2429_v10, %v1956_v9 }
 0x2a1   :  { %v2431_v15 = vpop.f32.mrf.mxu1 }
 0x2a2   :  { %v2001_v16 = vmax.f32 %v1996_v12, 0.0 }
 0x2a4   :  { %v2002_v18 = vpack.c.bf16 %v2001_v16, %v2001_v16 }
 0x2a6   :  { %2459 = vmatmul.mubr.bf16.vlgmr.msra.gmra.mxu0 %v2002_v18 }
 0x366   :  { %v2108_v20 = vpop.f32.mrf.mxu0 }
 0x367   :  { %v2109_v21 = vadd.f32 %v2380_v19, %v2108_v20 }
 0x368   :  { %v2460_v22 = vpop.f32.mrf.mxu0 }
 0x369   :  { %2114 = vmax.xlane.f32.xlu0 %v2109_v21 }
 0x36a   :  { %v2111_v23 = vpop.f32.mrf.mxu0 }
 0x36c   :  { %v2461_v24 = vpop.f32.mrf.mxu0 }
 0x3f2   :  { %v2115_v25 = vpop.xlane.xlu0 %2114 }
 0x3f3   :  { %v2116_v26 = vsub.f32 %v2109_v21, %v2115_v25 }
 0x3f5   :  { %v2117_v27 = vmul.f32 1.442695, %v2116_v26 }
 0x3f7   :  { %2816 = vpow2.f32 %v2117_v27 }
 0x404   :  { %v2817_v28 = vpop.eup %2816 }
 0x405   :  { %2119 = vadd.xlane.f32.xlu0 %v2817_v28 }
 0x48e   :  { %v2120_v29 = vpop.xlane.xlu0 %2119 }
 0x48f   :  { %2818 = vlog2.f32 %v2120_v29 }
 0x49c   :  { %v2819_v30 = vpop.eup %2818 }
 0x49d   :  { %v2122_v7 = vmul.f32 0.6931472, %v2819_v30 }
 0x49f   :  { %v2123_v31 = vsub.f32 %v2116_v26, %v2122_v7 }
 0x4a1   :  { %2124 = vst [vmem:[#allocation11] sm:$0xff] %v2123_v31 }
 0x4a2   :  { %2931 = shalt.err (!%p2928_p1)
}
 0x4a3   :  { %2134 = dma.vmem_to_hbm [thread:$0]  %s2132_s29, 128, %s3076_s7, [#allocation4]  }
 0x4a4   :  { %2946 = dma.done.wait [#allocation4], 128  }
 0x4a5   :  { %2947 = vsyncadd [#allocation4], 4294967168 }
 0x4a6   :  { %2138 = vsyncpa [#allocation3], 1 }
 0x4a7   :  { %2139 = vsyncpa [#allocation6], 1 }
 0x4a8   :  { %2140 = vsyncpa [#allocation9], 1 }
 0x4a9   :  { %2141 = vsyncpa [#allocation4], 1 }

</bundles_post_ra>
